<compile_context>
chip_gen: v7x
topology: tpu7x:2x2x1
jax: 0.10.0
libtpu: 0.0.40
codegen_flags: <defaults>
</compile_context>

<pallas_src>
import jax
import jax.numpy as jnp
from jax.experimental import pallas as pl
from jax.experimental.pallas import tpu as pltpu


def _decoder_kernel(x_ref, h0_ref, p_ref, out_ref, hout_ref):
    """Single invocation: batched GI precompute -> unrolled GRU recurrence (h in vregs)
    -> batched output projection. Everything VMEM/vreg-resident."""
    B, H = h0_ref.shape
    SB, I = x_ref.shape
    S = SB // B
    G = 3 * H

    # Unpack the single params slab with static slices (done once, off the serial chain).
    params = p_ref[...]                                   # (I + 2H + 3, 3H)
    w_ih = params[0:I, :]                                 # (I, 3H)
    w_hh = params[I:I + H, :]                             # (H, 3H)
    w_out = params[I + H:I + 2 * H, 0:I]                  # (H, I)   (lane-padded in slab)
    b_gi = params[I + 2 * H:I + 2 * H + 1, :]             # (1, 3H)  b_ih + b_hh[r,z]
    b_hn = params[I + 2 * H + 1:I + 2 * H + 2, 0:H]       # (1, H)   b_hh[n]
    b_out = params[I + 2 * H + 2:I + 2 * H + 3, 0:I]      # (1, I)

    # in_activation + input-gate matmul for ALL timesteps at once (non-recurrent),
    # then hoist the per-gate lane splits out of the recurrence.
    xs = jax.nn.sigmoid(x_ref[...])                                       # (S*B, I)
    gi = jnp.dot(xs, w_ih, preferred_element_type=jnp.float32) + b_gi     # (S*B, 3H)
    gi_r = gi[:, 0:H]                                                     # (S*B, H)
    gi_z = gi[:, H:2 * H]                                                 # (S*B, H)
    gi_n = gi[:, 2 * H:]                                                  # (S*B, H)

    # Recurrent part: one (B,H)@(H,3H) MXU op + gate math per step.
    # S is small & static -> fully unrolled Python loop, all slices static.
    h = h0_ref[...]                                                       # (B, H)
    hs = []
    for t in range(S):
        lo, hi = t * B, (t + 1) * B
        gh = jnp.dot(h, w_hh, preferred_element_type=jnp.float32)         # (B, 3H)
        r = jax.nn.sigmoid(gi_r[lo:hi, :] + gh[:, 0:H])
        z = jax.nn.sigmoid(gi_z[lo:hi, :] + gh[:, H:2 * H])
        n = jnp.tanh(gi_n[lo:hi, :] + r * (gh[:, 2 * H:] + b_hn))
        h = (1.0 - z) * n + z * h                                         # (B, H)
        hs.append(h)                                                      # stays in vregs

    hout_ref[...] = h.astype(hout_ref.dtype)                              # final hidden, once

    # Dropout(p=0.2): identity in eval mode (deterministic forward).
    # Batched output projection + single slab writeback; concat order is (t, b) row-major,
    # matching the (S*B, I) output reshape.
    hs_all = jnp.concatenate(hs, axis=0)                                  # (S*B, H)
    y = jnp.dot(hs_all, w_out, preferred_element_type=jnp.float32) + b_out
    out_ref[...] = y.astype(out_ref.dtype)


@jax.jit
def decoder_rnn_numerical(x, h0, w_ih_T, w_hh_T, b_ih, b_hh, w_out_T, b_out):
    """x: (S, B, I), h0: (1, B, H). Returns (output (S,B,I), hidden (1,B,H))."""
    S, B, I = x.shape
    H = w_hh_T.shape[0]
    G = 3 * H

    x_flat = x.astype(jnp.float32).reshape(S * B, I)
    h0_2d = h0[0].astype(jnp.float32)

    # Fold b_ih (all gates) plus the r/z parts of b_hh into the batched GI bias;
    # b_hh_n must stay in the recurrence (scaled by the reset gate r).
    bias_gi = (b_ih + jnp.concatenate(
        [b_hh[:2 * H], jnp.zeros((H,), b_hh.dtype)])).reshape(1, G)
    bias_hn = jnp.pad(b_hh[2 * H:].reshape(1, H), ((0, 0), (0, G - H)))
    b_out_p = jnp.pad(b_out.reshape(1, I), ((0, 0), (0, G - I)))
    w_out_p = jnp.pad(w_out_T, ((0, 0), (0, G - I)))

    # Single packed params slab: (I + 2H + 3, 3H).
    params = jnp.concatenate(
        [w_ih_T.astype(jnp.float32),
         w_hh_T.astype(jnp.float32),
         w_out_p.astype(jnp.float32),
         bias_gi.astype(jnp.float32),
         bias_hn.astype(jnp.float32),
         b_out_p.astype(jnp.float32)], axis=0)
    P_rows = I + 2 * H + 3

    out_flat, h_last = pl.pallas_call(
        _decoder_kernel,
        out_shape=(
            jax.ShapeDtypeStruct((S * B, I), jnp.float32),
            jax.ShapeDtypeStruct((B, H), jnp.float32),
        ),
        grid_spec=pltpu.PrefetchScalarGridSpec(
            num_scalar_prefetch=0,
            grid=(1,),                                            # single step; recurrence is in-kernel
            in_specs=[
                pl.BlockSpec((S * B, I), lambda i: (0, 0)),       # x (flattened, whole)
                pl.BlockSpec((B, H), lambda i: (0, 0)),           # h0
                pl.BlockSpec((P_rows, G), lambda i: (0, 0)),      # packed weights + biases
            ],
            out_specs=[
                pl.BlockSpec((S * B, I), lambda i: (0, 0)),       # output (single slab)
                pl.BlockSpec((B, H), lambda i: (0, 0)),           # final hidden
            ],
        ),
        compiler_params=pltpu.CompilerParams(
            dimension_semantics=("arbitrary",)),
    )(x_flat, h0_2d, params)

    return out_flat.reshape(S, B, I), h_last[None]                # (S,B,I), (1,B,H)


def _reference(x, h0, w_ih_T, w_hh_T, b_ih, b_hh, w_out_T, b_out):
    """Pure-JAX reference mirroring PyTorch GRU semantics (eval-mode dropout)."""
    H = w_hh_T.shape[0]

    def step(h, x_t):
        xs = jax.nn.sigmoid(x_t)
        gi = xs @ w_ih_T + b_ih
        gh = h @ w_hh_T + b_hh
        i_r, i_z, i_n = gi[:, :H], gi[:, H:2 * H], gi[:, 2 * H:]
        h_r, h_z, h_n = gh[:, :H], gh[:, H:2 * H], gh[:, 2 * H:]
        r = jax.nn.sigmoid(i_r + h_r)
        z = jax.nn.sigmoid(i_z + h_z)
        n = jnp.tanh(i_n + r * h_n)
        h_new = (1.0 - z) * n + z * h
        return h_new, h_new @ w_out_T + b_out

    h_last, ys = jax.lax.scan(step, h0[0], x)
    return ys, h_last[None]


if __name__ == "__main__":
    hidden_size = 32     # H
    output_size = 16     # O (== GRU input size)
    seq_len = 8
    batch = 2

    key = jax.random.PRNGKey(0)
    ks = jax.random.split(key, 8)
    bound = 1.0 / jnp.sqrt(hidden_size)

    # Parameters (deterministic init, PyTorch-style uniform(-1/sqrt(H), 1/sqrt(H))).
    w_ih = jax.random.uniform(ks[0], (3 * hidden_size, output_size), jnp.float32, -bound, bound)
    w_hh = jax.random.uniform(ks[1], (3 * hidden_size, hidden_size), jnp.float32, -bound, bound)
    b_ih = jax.random.uniform(ks[2], (3 * hidden_size,), jnp.float32, -bound, bound)
    b_hh = jax.random.uniform(ks[3], (3 * hidden_size,), jnp.float32, -bound, bound)
    w_out = jax.random.uniform(ks[4], (output_size, hidden_size), jnp.float32, -bound, bound)
    b_out = jax.random.uniform(ks[5], (output_size,), jnp.float32, -bound, bound)

    # Inputs.
    x = jax.random.normal(ks[6], (seq_len, batch, output_size), jnp.float32)
    h0 = jax.random.normal(ks[7], (1, batch, hidden_size), jnp.float32)

    w_ih_T = w_ih.T    # (I, 3H)
    w_hh_T = w_hh.T    # (H, 3H)
    w_out_T = w_out.T  # (H, O)

    out, h_new = decoder_rnn_numerical(x, h0, w_ih_T, w_hh_T, b_ih, b_hh, w_out_T, b_out)
    jax.block_until_ready((out, h_new))

    ref_out, ref_h = _reference(x, h0, w_ih_T, w_hh_T, b_ih, b_hh, w_out_T, b_out)
    assert out.shape == (seq_len, batch, output_size)
    assert h_new.shape == (1, batch, hidden_size)
    assert jnp.allclose(out, ref_out, atol=1e-5, rtol=1e-5)
    assert jnp.allclose(h_new, ref_h, atol=1e-5, rtol=1e-5)

    print("KERNEL_OK")
</pallas_src>

<mosaic_0001>
module attributes {stable_mosaic.version = 11 : i64} {
  func.func @_decoder_kernel(%arg0: i32, %arg1: memref<16x16xf32, #tpu.memory_space<vmem>>, %arg2: memref<2x32xf32, #tpu.memory_space<vmem>>, %arg3: memref<83x96xf32, #tpu.memory_space<vmem>>, %arg4: memref<16x16xf32, #tpu.memory_space<vmem>>, %arg5: memref<2x32xf32, #tpu.memory_space<vmem>>) attributes {dimension_semantics = [#tpu.dimension_semantics<arbitrary>], iteration_bounds = array<i64: 1>, scalar_prefetch = 0 : i64, scratch_operands = 0 : i64, tpu.core_type = #tpu.core_type<tc>, window_params = [{pipeline_mode = #tpu.pipeline_mode<synchronous>, transform_indices = @transform_0, window_bounds = array<i64: 16, 16>}, {pipeline_mode = #tpu.pipeline_mode<synchronous>, transform_indices = @transform_1, window_bounds = array<i64: 2, 32>}, {pipeline_mode = #tpu.pipeline_mode<synchronous>, transform_indices = @transform_2, window_bounds = array<i64: 83, 96>}, {pipeline_mode = #tpu.pipeline_mode<synchronous>, transform_indices = @transform_3, window_bounds = array<i64: 16, 16>}, {pipeline_mode = #tpu.pipeline_mode<synchronous>, transform_indices = @transform_4, window_bounds = array<i64: 2, 32>}]} {
    %c0 = arith.constant 0 : index
    %c0_0 = arith.constant 0 : index
    %0 = vector.load %arg3[%c0, %c0_0] : memref<83x96xf32, #tpu.memory_space<vmem>>, vector<83x96xf32>
    %1 = vector.extract_strided_slice %0 {offsets = [0, 0], sizes = [16, 96], strides = [1, 1]} : vector<83x96xf32> to vector<16x96xf32>
    %2 = vector.extract_strided_slice %0 {offsets = [16, 0], sizes = [32, 96], strides = [1, 1]} : vector<83x96xf32> to vector<32x96xf32>
    %3 = vector.extract_strided_slice %0 {offsets = [48, 0], sizes = [32, 16], strides = [1, 1]} : vector<83x96xf32> to vector<32x16xf32>
    %4 = vector.extract_strided_slice %0 {offsets = [80, 0], sizes = [1, 96], strides = [1, 1]} : vector<83x96xf32> to vector<1x96xf32>
    %5 = vector.extract_strided_slice %0 {offsets = [81, 0], sizes = [1, 32], strides = [1, 1]} : vector<83x96xf32> to vector<1x32xf32>
    %6 = vector.extract_strided_slice %0 {offsets = [82, 0], sizes = [1, 16], strides = [1, 1]} : vector<83x96xf32> to vector<1x16xf32>
    %c0_1 = arith.constant 0 : index
    %c0_2 = arith.constant 0 : index
    %7 = vector.load %arg1[%c0_1, %c0_2] : memref<16x16xf32, #tpu.memory_space<vmem>>, vector<16x16xf32>
    %8 = arith.negf %7 : vector<16x16xf32>
    %9 = math.exp %8 : vector<16x16xf32>
    %cst = arith.constant 1.000000e+00 : f32
    %10 = vector.broadcast %cst : f32 to vector<16x16xf32>
    %11 = arith.addf %10, %9 : vector<16x16xf32>
    %12 = arith.divf %10, %11 : vector<16x16xf32>
    %cst_3 = arith.constant dense<0.000000e+00> : vector<16x96xf32>
    %13 = tpu.matmul %12, %1, %cst_3 {dimension_numbers = #tpu.dot_dimension_numbers<[1], [0], [0], [1], [0, 0, 1, 1], [], []>} : vector<16x16xf32>, vector<16x96xf32>, vector<16x96xf32> -> vector<16x96xf32>
    %14 = vector.broadcast %4 : vector<1x96xf32> to vector<16x96xf32>
    %15 = arith.addf %13, %14 : vector<16x96xf32>
    %16 = vector.extract_strided_slice %15 {offsets = [0, 0], sizes = [16, 32], strides = [1, 1]} : vector<16x96xf32> to vector<16x32xf32>
    %17 = vector.extract_strided_slice %15 {offsets = [0, 32], sizes = [16, 32], strides = [1, 1]} : vector<16x96xf32> to vector<16x32xf32>
    %18 = vector.extract_strided_slice %15 {offsets = [0, 64], sizes = [16, 32], strides = [1, 1]} : vector<16x96xf32> to vector<16x32xf32>
    %c0_4 = arith.constant 0 : index
    %c0_5 = arith.constant 0 : index
    %19 = vector.load %arg2[%c0_4, %c0_5] : memref<2x32xf32, #tpu.memory_space<vmem>>, vector<2x32xf32>
    %cst_6 = arith.constant dense<0.000000e+00> : vector<2x96xf32>
    %20 = tpu.matmul %19, %2, %cst_6 {dimension_numbers = #tpu.dot_dimension_numbers<[1], [0], [0], [1], [0, 0, 1, 1], [], []>} : vector<2x32xf32>, vector<32x96xf32>, vector<2x96xf32> -> vector<2x96xf32>
    %21 = vector.extract_strided_slice %16 {offsets = [0, 0], sizes = [2, 32], strides = [1, 1]} : vector<16x32xf32> to vector<2x32xf32>
    %22 = vector.extract_strided_slice %20 {offsets = [0, 0], sizes = [2, 32], strides = [1, 1]} : vector<2x96xf32> to vector<2x32xf32>
    %23 = arith.addf %21, %22 : vector<2x32xf32>
    %24 = arith.negf %23 : vector<2x32xf32>
    %25 = math.exp %24 : vector<2x32xf32>
    %cst_7 = arith.constant 1.000000e+00 : f32
    %26 = vector.broadcast %cst_7 : f32 to vector<2x32xf32>
    %27 = arith.addf %26, %25 : vector<2x32xf32>
    %28 = arith.divf %26, %27 : vector<2x32xf32>
    %29 = vector.extract_strided_slice %17 {offsets = [0, 0], sizes = [2, 32], strides = [1, 1]} : vector<16x32xf32> to vector<2x32xf32>
    %30 = vector.extract_strided_slice %20 {offsets = [0, 32], sizes = [2, 32], strides = [1, 1]} : vector<2x96xf32> to vector<2x32xf32>
    %31 = arith.addf %29, %30 : vector<2x32xf32>
    %32 = arith.negf %31 : vector<2x32xf32>
    %33 = math.exp %32 : vector<2x32xf32>
    %cst_8 = arith.constant 1.000000e+00 : f32
    %34 = vector.broadcast %cst_8 : f32 to vector<2x32xf32>
    %35 = arith.addf %34, %33 : vector<2x32xf32>
    %36 = arith.divf %34, %35 : vector<2x32xf32>
    %37 = vector.extract_strided_slice %18 {offsets = [0, 0], sizes = [2, 32], strides = [1, 1]} : vector<16x32xf32> to vector<2x32xf32>
    %38 = vector.extract_strided_slice %20 {offsets = [0, 64], sizes = [2, 32], strides = [1, 1]} : vector<2x96xf32> to vector<2x32xf32>
    %39 = vector.broadcast %5 : vector<1x32xf32> to vector<2x32xf32>
    %40 = arith.addf %38, %39 : vector<2x32xf32>
    %41 = arith.mulf %28, %40 : vector<2x32xf32>
    %42 = arith.addf %37, %41 : vector<2x32xf32>
    %43 = math.tanh %42 : vector<2x32xf32>
    %cst_9 = arith.constant 1.000000e+00 : f32
    %44 = vector.broadcast %cst_9 : f32 to vector<2x32xf32>
    %45 = arith.subf %44, %36 : vector<2x32xf32>
    %46 = arith.mulf %45, %43 : vector<2x32xf32>
    %47 = arith.mulf %36, %19 : vector<2x32xf32>
    %48 = arith.addf %46, %47 : vector<2x32xf32>
    %cst_10 = arith.constant dense<0.000000e+00> : vector<2x96xf32>
    %49 = tpu.matmul %48, %2, %cst_10 {dimension_numbers = #tpu.dot_dimension_numbers<[1], [0], [0], [1], [0, 0, 1, 1], [], []>} : vector<2x32xf32>, vector<32x96xf32>, vector<2x96xf32> -> vector<2x96xf32>
    %50 = vector.extract_strided_slice %16 {offsets = [2, 0], sizes = [2, 32], strides = [1, 1]} : vector<16x32xf32> to vector<2x32xf32>
    %51 = vector.extract_strided_slice %49 {offsets = [0, 0], sizes = [2, 32], strides = [1, 1]} : vector<2x96xf32> to vector<2x32xf32>
    %52 = arith.addf %50, %51 : vector<2x32xf32>
    %53 = arith.negf %52 : vector<2x32xf32>
    %54 = math.exp %53 : vector<2x32xf32>
    %cst_11 = arith.constant 1.000000e+00 : f32
    %55 = vector.broadcast %cst_11 : f32 to vector<2x32xf32>
    %56 = arith.addf %55, %54 : vector<2x32xf32>
    %57 = arith.divf %55, %56 : vector<2x32xf32>
    %58 = vector.extract_strided_slice %17 {offsets = [2, 0], sizes = [2, 32], strides = [1, 1]} : vector<16x32xf32> to vector<2x32xf32>
    %59 = vector.extract_strided_slice %49 {offsets = [0, 32], sizes = [2, 32], strides = [1, 1]} : vector<2x96xf32> to vector<2x32xf32>
    %60 = arith.addf %58, %59 : vector<2x32xf32>
    %61 = arith.negf %60 : vector<2x32xf32>
    %62 = math.exp %61 : vector<2x32xf32>
    %cst_12 = arith.constant 1.000000e+00 : f32
    %63 = vector.broadcast %cst_12 : f32 to vector<2x32xf32>
    %64 = arith.addf %63, %62 : vector<2x32xf32>
    %65 = arith.divf %63, %64 : vector<2x32xf32>
    %66 = vector.extract_strided_slice %18 {offsets = [2, 0], sizes = [2, 32], strides = [1, 1]} : vector<16x32xf32> to vector<2x32xf32>
    %67 = vector.extract_strided_slice %49 {offsets = [0, 64], sizes = [2, 32], strides = [1, 1]} : vector<2x96xf32> to vector<2x32xf32>
    %68 = vector.broadcast %5 : vector<1x32xf32> to vector<2x32xf32>
    %69 = arith.addf %67, %68 : vector<2x32xf32>
    %70 = arith.mulf %57, %69 : vector<2x32xf32>
    %71 = arith.addf %66, %70 : vector<2x32xf32>
    %72 = math.tanh %71 : vector<2x32xf32>
    %cst_13 = arith.constant 1.000000e+00 : f32
    %73 = vector.broadcast %cst_13 : f32 to vector<2x32xf32>
    %74 = arith.subf %73, %65 : vector<2x32xf32>
    %75 = arith.mulf %74, %72 : vector<2x32xf32>
    %76 = arith.mulf %65, %48 : vector<2x32xf32>
    %77 = arith.addf %75, %76 : vector<2x32xf32>
    %cst_14 = arith.constant dense<0.000000e+00> : vector<2x96xf32>
    %78 = tpu.matmul %77, %2, %cst_14 {dimension_numbers = #tpu.dot_dimension_numbers<[1], [0], [0], [1], [0, 0, 1, 1], [], []>} : vector<2x32xf32>, vector<32x96xf32>, vector<2x96xf32> -> vector<2x96xf32>
    %79 = vector.extract_strided_slice %16 {offsets = [4, 0], sizes = [2, 32], strides = [1, 1]} : vector<16x32xf32> to vector<2x32xf32>
    %80 = vector.extract_strided_slice %78 {offsets = [0, 0], sizes = [2, 32], strides = [1, 1]} : vector<2x96xf32> to vector<2x32xf32>
    %81 = arith.addf %79, %80 : vector<2x32xf32>
    %82 = arith.negf %81 : vector<2x32xf32>
    %83 = math.exp %82 : vector<2x32xf32>
    %cst_15 = arith.constant 1.000000e+00 : f32
    %84 = vector.broadcast %cst_15 : f32 to vector<2x32xf32>
    %85 = arith.addf %84, %83 : vector<2x32xf32>
    %86 = arith.divf %84, %85 : vector<2x32xf32>
    %87 = vector.extract_strided_slice %17 {offsets = [4, 0], sizes = [2, 32], strides = [1, 1]} : vector<16x32xf32> to vector<2x32xf32>
    %88 = vector.extract_strided_slice %78 {offsets = [0, 32], sizes = [2, 32], strides = [1, 1]} : vector<2x96xf32> to vector<2x32xf32>
    %89 = arith.addf %87, %88 : vector<2x32xf32>
    %90 = arith.negf %89 : vector<2x32xf32>
    %91 = math.exp %90 : vector<2x32xf32>
    %cst_16 = arith.constant 1.000000e+00 : f32
    %92 = vector.broadcast %cst_16 : f32 to vector<2x32xf32>
    %93 = arith.addf %92, %91 : vector<2x32xf32>
    %94 = arith.divf %92, %93 : vector<2x32xf32>
    %95 = vector.extract_strided_slice %18 {offsets = [4, 0], sizes = [2, 32], strides = [1, 1]} : vector<16x32xf32> to vector<2x32xf32>
    %96 = vector.extract_strided_slice %78 {offsets = [0, 64], sizes = [2, 32], strides = [1, 1]} : vector<2x96xf32> to vector<2x32xf32>
    %97 = vector.broadcast %5 : vector<1x32xf32> to vector<2x32xf32>
    %98 = arith.addf %96, %97 : vector<2x32xf32>
    %99 = arith.mulf %86, %98 : vector<2x32xf32>
    %100 = arith.addf %95, %99 : vector<2x32xf32>
    %101 = math.tanh %100 : vector<2x32xf32>
    %cst_17 = arith.constant 1.000000e+00 : f32
    %102 = vector.broadcast %cst_17 : f32 to vector<2x32xf32>
    %103 = arith.subf %102, %94 : vector<2x32xf32>
    %104 = arith.mulf %103, %101 : vector<2x32xf32>
    %105 = arith.mulf %94, %77 : vector<2x32xf32>
    %106 = arith.addf %104, %105 : vector<2x32xf32>
    %cst_18 = arith.constant dense<0.000000e+00> : vector<2x96xf32>
    %107 = tpu.matmul %106, %2, %cst_18 {dimension_numbers = #tpu.dot_dimension_numbers<[1], [0], [0], [1], [0, 0, 1, 1], [], []>} : vector<2x32xf32>, vector<32x96xf32>, vector<2x96xf32> -> vector<2x96xf32>
    %108 = vector.extract_strided_slice %16 {offsets = [6, 0], sizes = [2, 32], strides = [1, 1]} : vector<16x32xf32> to vector<2x32xf32>
    %109 = vector.extract_strided_slice %107 {offsets = [0, 0], sizes = [2, 32], strides = [1, 1]} : vector<2x96xf32> to vector<2x32xf32>
    %110 = arith.addf %108, %109 : vector<2x32xf32>
    %111 = arith.negf %110 : vector<2x32xf32>
    %112 = math.exp %111 : vector<2x32xf32>
    %cst_19 = arith.constant 1.000000e+00 : f32
    %113 = vector.broadcast %cst_19 : f32 to vector<2x32xf32>
    %114 = arith.addf %113, %112 : vector<2x32xf32>
    %115 = arith.divf %113, %114 : vector<2x32xf32>
    %116 = vector.extract_strided_slice %17 {offsets = [6, 0], sizes = [2, 32], strides = [1, 1]} : vector<16x32xf32> to vector<2x32xf32>
    %117 = vector.extract_strided_slice %107 {offsets = [0, 32], sizes = [2, 32], strides = [1, 1]} : vector<2x96xf32> to vector<2x32xf32>
    %118 = arith.addf %116, %117 : vector<2x32xf32>
    %119 = arith.negf %118 : vector<2x32xf32>
    %120 = math.exp %119 : vector<2x32xf32>
    %cst_20 = arith.constant 1.000000e+00 : f32
    %121 = vector.broadcast %cst_20 : f32 to vector<2x32xf32>
    %122 = arith.addf %121, %120 : vector<2x32xf32>
    %123 = arith.divf %121, %122 : vector<2x32xf32>
    %124 = vector.extract_strided_slice %18 {offsets = [6, 0], sizes = [2, 32], strides = [1, 1]} : vector<16x32xf32> to vector<2x32xf32>
    %125 = vector.extract_strided_slice %107 {offsets = [0, 64], sizes = [2, 32], strides = [1, 1]} : vector<2x96xf32> to vector<2x32xf32>
    %126 = vector.broadcast %5 : vector<1x32xf32> to vector<2x32xf32>
    %127 = arith.addf %125, %126 : vector<2x32xf32>
    %128 = arith.mulf %115, %127 : vector<2x32xf32>
    %129 = arith.addf %124, %128 : vector<2x32xf32>
    %130 = math.tanh %129 : vector<2x32xf32>
    %cst_21 = arith.constant 1.000000e+00 : f32
    %131 = vector.broadcast %cst_21 : f32 to vector<2x32xf32>
    %132 = arith.subf %131, %123 : vector<2x32xf32>
    %133 = arith.mulf %132, %130 : vector<2x32xf32>
    %134 = arith.mulf %123, %106 : vector<2x32xf32>
    %135 = arith.addf %133, %134 : vector<2x32xf32>
    %cst_22 = arith.constant dense<0.000000e+00> : vector<2x96xf32>
    %136 = tpu.matmul %135, %2, %cst_22 {dimension_numbers = #tpu.dot_dimension_numbers<[1], [0], [0], [1], [0, 0, 1, 1], [], []>} : vector<2x32xf32>, vector<32x96xf32>, vector<2x96xf32> -> vector<2x96xf32>
    %137 = vector.extract_strided_slice %16 {offsets = [8, 0], sizes = [2, 32], strides = [1, 1]} : vector<16x32xf32> to vector<2x32xf32>
    %138 = vector.extract_strided_slice %136 {offsets = [0, 0], sizes = [2, 32], strides = [1, 1]} : vector<2x96xf32> to vector<2x32xf32>
    %139 = arith.addf %137, %138 : vector<2x32xf32>
    %140 = arith.negf %139 : vector<2x32xf32>
    %141 = math.exp %140 : vector<2x32xf32>
    %cst_23 = arith.constant 1.000000e+00 : f32
    %142 = vector.broadcast %cst_23 : f32 to vector<2x32xf32>
    %143 = arith.addf %142, %141 : vector<2x32xf32>
    %144 = arith.divf %142, %143 : vector<2x32xf32>
    %145 = vector.extract_strided_slice %17 {offsets = [8, 0], sizes = [2, 32], strides = [1, 1]} : vector<16x32xf32> to vector<2x32xf32>
    %146 = vector.extract_strided_slice %136 {offsets = [0, 32], sizes = [2, 32], strides = [1, 1]} : vector<2x96xf32> to vector<2x32xf32>
    %147 = arith.addf %145, %146 : vector<2x32xf32>
    %148 = arith.negf %147 : vector<2x32xf32>
    %149 = math.exp %148 : vector<2x32xf32>
    %cst_24 = arith.constant 1.000000e+00 : f32
    %150 = vector.broadcast %cst_24 : f32 to vector<2x32xf32>
    %151 = arith.addf %150, %149 : vector<2x32xf32>
    %152 = arith.divf %150, %151 : vector<2x32xf32>
    %153 = vector.extract_strided_slice %18 {offsets = [8, 0], sizes = [2, 32], strides = [1, 1]} : vector<16x32xf32> to vector<2x32xf32>
    %154 = vector.extract_strided_slice %136 {offsets = [0, 64], sizes = [2, 32], strides = [1, 1]} : vector<2x96xf32> to vector<2x32xf32>
    %155 = vector.broadcast %5 : vector<1x32xf32> to vector<2x32xf32>
    %156 = arith.addf %154, %155 : vector<2x32xf32>
    %157 = arith.mulf %144, %156 : vector<2x32xf32>
    %158 = arith.addf %153, %157 : vector<2x32xf32>
    %159 = math.tanh %158 : vector<2x32xf32>
    %cst_25 = arith.constant 1.000000e+00 : f32
    %160 = vector.broadcast %cst_25 : f32 to vector<2x32xf32>
    %161 = arith.subf %160, %152 : vector<2x32xf32>
    %162 = arith.mulf %161, %159 : vector<2x32xf32>
    %163 = arith.mulf %152, %135 : vector<2x32xf32>
    %164 = arith.addf %162, %163 : vector<2x32xf32>
    %cst_26 = arith.constant dense<0.000000e+00> : vector<2x96xf32>
    %165 = tpu.matmul %164, %2, %cst_26 {dimension_numbers = #tpu.dot_dimension_numbers<[1], [0], [0], [1], [0, 0, 1, 1], [], []>} : vector<2x32xf32>, vector<32x96xf32>, vector<2x96xf32> -> vector<2x96xf32>
    %166 = vector.extract_strided_slice %16 {offsets = [10, 0], sizes = [2, 32], strides = [1, 1]} : vector<16x32xf32> to vector<2x32xf32>
    %167 = vector.extract_strided_slice %165 {offsets = [0, 0], sizes = [2, 32], strides = [1, 1]} : vector<2x96xf32> to vector<2x32xf32>
    %168 = arith.addf %166, %167 : vector<2x32xf32>
    %169 = arith.negf %168 : vector<2x32xf32>
    %170 = math.exp %169 : vector<2x32xf32>
    %cst_27 = arith.constant 1.000000e+00 : f32
    %171 = vector.broadcast %cst_27 : f32 to vector<2x32xf32>
    %172 = arith.addf %171, %170 : vector<2x32xf32>
    %173 = arith.divf %171, %172 : vector<2x32xf32>
    %174 = vector.extract_strided_slice %17 {offsets = [10, 0], sizes = [2, 32], strides = [1, 1]} : vector<16x32xf32> to vector<2x32xf32>
    %175 = vector.extract_strided_slice %165 {offsets = [0, 32], sizes = [2, 32], strides = [1, 1]} : vector<2x96xf32> to vector<2x32xf32>
    %176 = arith.addf %174, %175 : vector<2x32xf32>
    %177 = arith.negf %176 : vector<2x32xf32>
    %178 = math.exp %177 : vector<2x32xf32>
    %cst_28 = arith.constant 1.000000e+00 : f32
    %179 = vector.broadcast %cst_28 : f32 to vector<2x32xf32>
    %180 = arith.addf %179, %178 : vector<2x32xf32>
    %181 = arith.divf %179, %180 : vector<2x32xf32>
    %182 = vector.extract_strided_slice %18 {offsets = [10, 0], sizes = [2, 32], strides = [1, 1]} : vector<16x32xf32> to vector<2x32xf32>
    %183 = vector.extract_strided_slice %165 {offsets = [0, 64], sizes = [2, 32], strides = [1, 1]} : vector<2x96xf32> to vector<2x32xf32>
    %184 = vector.broadcast %5 : vector<1x32xf32> to vector<2x32xf32>
    %185 = arith.addf %183, %184 : vector<2x32xf32>
    %186 = arith.mulf %173, %185 : vector<2x32xf32>
    %187 = arith.addf %182, %186 : vector<2x32xf32>
    %188 = math.tanh %187 : vector<2x32xf32>
    %cst_29 = arith.constant 1.000000e+00 : f32
    %189 = vector.broadcast %cst_29 : f32 to vector<2x32xf32>
    %190 = arith.subf %189, %181 : vector<2x32xf32>
    %191 = arith.mulf %190, %188 : vector<2x32xf32>
    %192 = arith.mulf %181, %164 : vector<2x32xf32>
    %193 = arith.addf %191, %192 : vector<2x32xf32>
    %cst_30 = arith.constant dense<0.000000e+00> : vector<2x96xf32>
    %194 = tpu.matmul %193, %2, %cst_30 {dimension_numbers = #tpu.dot_dimension_numbers<[1], [0], [0], [1], [0, 0, 1, 1], [], []>} : vector<2x32xf32>, vector<32x96xf32>, vector<2x96xf32> -> vector<2x96xf32>
    %195 = vector.extract_strided_slice %16 {offsets = [12, 0], sizes = [2, 32], strides = [1, 1]} : vector<16x32xf32> to vector<2x32xf32>
    %196 = vector.extract_strided_slice %194 {offsets = [0, 0], sizes = [2, 32], strides = [1, 1]} : vector<2x96xf32> to vector<2x32xf32>
    %197 = arith.addf %195, %196 : vector<2x32xf32>
    %198 = arith.negf %197 : vector<2x32xf32>
    %199 = math.exp %198 : vector<2x32xf32>
    %cst_31 = arith.constant 1.000000e+00 : f32
    %200 = vector.broadcast %cst_31 : f32 to vector<2x32xf32>
    %201 = arith.addf %200, %199 : vector<2x32xf32>
    %202 = arith.divf %200, %201 : vector<2x32xf32>
    %203 = vector.extract_strided_slice %17 {offsets = [12, 0], sizes = [2, 32], strides = [1, 1]} : vector<16x32xf32> to vector<2x32xf32>
    %204 = vector.extract_strided_slice %194 {offsets = [0, 32], sizes = [2, 32], strides = [1, 1]} : vector<2x96xf32> to vector<2x32xf32>
    %205 = arith.addf %203, %204 : vector<2x32xf32>
    %206 = arith.negf %205 : vector<2x32xf32>
    %207 = math.exp %206 : vector<2x32xf32>
    %cst_32 = arith.constant 1.000000e+00 : f32
    %208 = vector.broadcast %cst_32 : f32 to vector<2x32xf32>
    %209 = arith.addf %208, %207 : vector<2x32xf32>
    %210 = arith.divf %208, %209 : vector<2x32xf32>
    %211 = vector.extract_strided_slice %18 {offsets = [12, 0], sizes = [2, 32], strides = [1, 1]} : vector<16x32xf32> to vector<2x32xf32>
    %212 = vector.extract_strided_slice %194 {offsets = [0, 64], sizes = [2, 32], strides = [1, 1]} : vector<2x96xf32> to vector<2x32xf32>
    %213 = vector.broadcast %5 : vector<1x32xf32> to vector<2x32xf32>
    %214 = arith.addf %212, %213 : vector<2x32xf32>
    %215 = arith.mulf %202, %214 : vector<2x32xf32>
    %216 = arith.addf %211, %215 : vector<2x32xf32>
    %217 = math.tanh %216 : vector<2x32xf32>
    %cst_33 = arith.constant 1.000000e+00 : f32
    %218 = vector.broadcast %cst_33 : f32 to vector<2x32xf32>
    %219 = arith.subf %218, %210 : vector<2x32xf32>
    %220 = arith.mulf %219, %217 : vector<2x32xf32>
    %221 = arith.mulf %210, %193 : vector<2x32xf32>
    %222 = arith.addf %220, %221 : vector<2x32xf32>
    %cst_34 = arith.constant dense<0.000000e+00> : vector<2x96xf32>
    %223 = tpu.matmul %222, %2, %cst_34 {dimension_numbers = #tpu.dot_dimension_numbers<[1], [0], [0], [1], [0, 0, 1, 1], [], []>} : vector<2x32xf32>, vector<32x96xf32>, vector<2x96xf32> -> vector<2x96xf32>
    %224 = vector.extract_strided_slice %16 {offsets = [14, 0], sizes = [2, 32], strides = [1, 1]} : vector<16x32xf32> to vector<2x32xf32>
    %225 = vector.extract_strided_slice %223 {offsets = [0, 0], sizes = [2, 32], strides = [1, 1]} : vector<2x96xf32> to vector<2x32xf32>
    %226 = arith.addf %224, %225 : vector<2x32xf32>
    %227 = arith.negf %226 : vector<2x32xf32>
    %228 = math.exp %227 : vector<2x32xf32>
    %cst_35 = arith.constant 1.000000e+00 : f32
    %229 = vector.broadcast %cst_35 : f32 to vector<2x32xf32>
    %230 = arith.addf %229, %228 : vector<2x32xf32>
    %231 = arith.divf %229, %230 : vector<2x32xf32>
    %232 = vector.extract_strided_slice %17 {offsets = [14, 0], sizes = [2, 32], strides = [1, 1]} : vector<16x32xf32> to vector<2x32xf32>
    %233 = vector.extract_strided_slice %223 {offsets = [0, 32], sizes = [2, 32], strides = [1, 1]} : vector<2x96xf32> to vector<2x32xf32>
    %234 = arith.addf %232, %233 : vector<2x32xf32>
    %235 = arith.negf %234 : vector<2x32xf32>
    %236 = math.exp %235 : vector<2x32xf32>
    %cst_36 = arith.constant 1.000000e+00 : f32
    %237 = vector.broadcast %cst_36 : f32 to vector<2x32xf32>
    %238 = arith.addf %237, %236 : vector<2x32xf32>
    %239 = arith.divf %237, %238 : vector<2x32xf32>
    %240 = vector.extract_strided_slice %18 {offsets = [14, 0], sizes = [2, 32], strides = [1, 1]} : vector<16x32xf32> to vector<2x32xf32>
    %241 = vector.extract_strided_slice %223 {offsets = [0, 64], sizes = [2, 32], strides = [1, 1]} : vector<2x96xf32> to vector<2x32xf32>
    %242 = vector.broadcast %5 : vector<1x32xf32> to vector<2x32xf32>
    %243 = arith.addf %241, %242 : vector<2x32xf32>
    %244 = arith.mulf %231, %243 : vector<2x32xf32>
    %245 = arith.addf %240, %244 : vector<2x32xf32>
    %246 = math.tanh %245 : vector<2x32xf32>
    %cst_37 = arith.constant 1.000000e+00 : f32
    %247 = vector.broadcast %cst_37 : f32 to vector<2x32xf32>
    %248 = arith.subf %247, %239 : vector<2x32xf32>
    %249 = arith.mulf %248, %246 : vector<2x32xf32>
    %250 = arith.mulf %239, %222 : vector<2x32xf32>
    %251 = arith.addf %249, %250 : vector<2x32xf32>
    %c0_38 = arith.constant 0 : index
    %c0_39 = arith.constant 0 : index
    %252 = vector.load %arg5[%c0_38, %c0_39] : memref<2x32xf32, #tpu.memory_space<vmem>>, vector<2x32xf32>
    tpu.vector_store %arg5[%c0_38, %c0_39], %251 {strides = array<i32>} : memref<2x32xf32, #tpu.memory_space<vmem>>, vector<2x32xf32>,
    %253 = tpu.concatenate %48, %77, %106, %135, %164, %193, %222, %251 in 0 : vector<2x32xf32>, vector<2x32xf32>, vector<2x32xf32>, vector<2x32xf32>, vector<2x32xf32>, vector<2x32xf32>, vector<2x32xf32>, vector<2x32xf32> -> vector<16x32xf32>
    %cst_40 = arith.constant dense<0.000000e+00> : vector<16x16xf32>
    %254 = tpu.matmul %253, %3, %cst_40 {dimension_numbers = #tpu.dot_dimension_numbers<[1], [0], [0], [1], [0, 0, 1, 1], [], []>} : vector<16x32xf32>, vector<32x16xf32>, vector<16x16xf32> -> vector<16x16xf32>
    %255 = vector.broadcast %6 : vector<1x16xf32> to vector<16x16xf32>
    %256 = arith.addf %254, %255 : vector<16x16xf32>
    %c0_41 = arith.constant 0 : index
    %c0_42 = arith.constant 0 : index
    %257 = vector.load %arg4[%c0_41, %c0_42] : memref<16x16xf32, #tpu.memory_space<vmem>>, vector<16x16xf32>
    tpu.vector_store %arg4[%c0_41, %c0_42], %256 {strides = array<i32>} : memref<16x16xf32, #tpu.memory_space<vmem>>, vector<16x16xf32>,
    return
  }
  func.func @transform_0(%arg0: i32) -> (i32, i32) {
    %c0_i32 = arith.constant 0 : i32
    %c0_i32_0 = arith.constant 0 : i32
    %c0_i32_1 = arith.constant 0 : i32
    return %c0_i32, %c0_i32_0 : i32, i32
  }
  func.func @transform_1(%arg0: i32) -> (i32, i32) {
    %c0_i32 = arith.constant 0 : i32
    %c0_i32_0 = arith.constant 0 : i32
    %c0_i32_1 = arith.constant 0 : i32
    return %c0_i32, %c0_i32_0 : i32, i32
  }
  func.func @transform_2(%arg0: i32) -> (i32, i32) {
    %c0_i32 = arith.constant 0 : i32
    %c0_i32_0 = arith.constant 0 : i32
    %c0_i32_1 = arith.constant 0 : i32
    return %c0_i32, %c0_i32_0 : i32, i32
  }
  func.func @transform_3(%arg0: i32) -> (i32, i32) {
    %c0_i32 = arith.constant 0 : i32
    %c0_i32_0 = arith.constant 0 : i32
    %c0_i32_1 = arith.constant 0 : i32
    return %c0_i32, %c0_i32_0 : i32, i32
  }
  func.func @transform_4(%arg0: i32) -> (i32, i32) {
    %c0_i32 = arith.constant 0 : i32
    %c0_i32_0 = arith.constant 0 : i32
    %c0_i32_1 = arith.constant 0 : i32
    return %c0_i32, %c0_i32_0 : i32, i32
  }
}

</mosaic_0001>

<bundles_post_ra>
// kernel: decoder_rnn_numerical.1
= control target key start
LH: loop header
LB: loop body
LE: loop exit
PB: predicated region body
PF: predicated region fallthrough
CT: control target
= control target key end

     0   :  { %10 = vsyncpa [#allocation3], 0  ;;  %v43_v3 = vlaneseq  ;;  %v1486_v4 = vmov 0.0|0.0   ;;  %vm1487_vm0 = vmmov 0   ;;  %v1488_v7 = vmov 0.0   ;;  %s1747_s0 = inlined_call_operand.vmem [shape: f32[16,16], index: 0, kind: input, shape index: {}]   ;;  %s1748_s1 = inlined_call_operand.vmem [shape: f32[2,32], index: 1, kind: input, shape index: {}]   ;;  %s1749_s2 = inlined_call_operand.vmem [shape: f32[83,96], index: 2, kind: input, shape index: {}]   ;;  %s1750_s3 = inlined_call_operand.hbm [shape: f32[16,16], index: 3, kind: output, shape index: {0}]   ;;  %s1751_s4 = inlined_call_operand.hbm [shape: f32[2,32], index: 4, kind: output, shape index: {1}]  }
   0x1   :  { %v20_v0 = vld [vmem:[%s1749_s2 + $0x10] sm:$0xff]  ;;  %v21_v1 = vld [vmem:[%s1749_s2 + $0x18] sm:$0xff]  ;;  %v22_v2 = vld [vmem:[%s1749_s2 + $0x20] sm:$0xff]  ;;  %1316 = vmatprep.subr.bf16.mxu1 %v1486_v4  ;;  %1221 = vmatprep.mubr.msk.f32.mxu1 %vm1487_vm0, %v1488_v7 }
   0x2   :  { %v1531_v5 = vpack.c.bf16 %v21_v1, %v20_v0  ;;  %v23_v6 = vld [vmem:[%s1749_s2 + $0x28] sm:$0xff]  ;;  %v18_v8 = vld [vmem:[%s1749_s2] sm:$0xff]  ;;  %v1550_v12 = vshrl.u32 %v43_v3, 7  ;;  %v1558_v17 = vld [vmem:[%s1749_s2 + $0x50] sm:$0x7] }
   0x3   :  { %v19_v9 = vld [vmem:[%s1749_s2 + $0x8] sm:$0xff]  ;;  %v29_v10 = vld [vmem:[%s1747_s0] sm:$0xff]  ;;  %v1553_v13 = vpack.c.bf16 %v23_v6, %v22_v2 }
   0x4   :  { %v30_v11 = vld [vmem:[%s1747_s0 + $0x8] sm:$0xff]  ;;  %1318 = vmatpush3.bf16.msra.mxu1 %v1531_v5  ;;  %v1312_v14 = vpack.c.bf16 %v19_v9, %v18_v8  ;;  %v1134_v15 = vmul.f32 -1.442695, %v29_v10  ;;  %v213_v18 = vsub.s32 1, %v1550_v12 }
   0x5   :  { %v1135_v16 = vmul.f32 -1.442695, %v30_v11  ;;  %1319 = vmatprep.subr.bf16.mxu1 %v1486_v4 }
   0x6   :  { %11 = vsyncpa [#allocation5], 0  ;;  %1313 = vmatprep.subr.bf16.mxu0 %v1312_v14  ;;  %1382 = vpow2.f32 %v1134_v15  ;;  %v214_v19 = vrot.slane %v1558_v17, %v213_v18  ;;  %v129_v20 = vld [vmem:[%s1748_s1] sm:$0x3]  ;;  %vm130_vm1 = vcmask 261120   ;;  %s1489_s8 = smov 64  }
   0x7   :  { %1315 = vmatpush3.bf16.msra.mxu0 %v1312_v14  ;;  %1384 = vpow2.f32 %v1135_v16  ;;  %vm47_vm2 = vcmask 130048   ;;  %s1490_s1 = smov 32   ;;  %v45_v31 = vsub.s32 0, %v1550_v12  ;;  %s1491_s9 = smov 96   ;;  %vm1004_vm3 = vcmask 1041408  }
   0x8   :  { %1321 = vmatpush3.bf16.msra.mxu1 %v1553_v13  ;;  %1322 = vmatprep.subr.bf16.mxu0 %v1486_v4  ;;  %vm1006_vm4 = vcmask 1043456   ;;  %vm1008_vm5 = vcmask 1045504   ;;  %vm1002_vm6 = vcmask 261126  }
   0x9   :  { %216 = vrot.lane.b32.xlu0 %v214_v19, %s1489_s8  ;;  %1328 = vmatprep.subr.bf16.mxu1 %v1486_v4  ;;  %v46_v32 = vrot.slane %v1558_v17, %v45_v31 }
   0xb   :  { %1222 = vmatmul.mubr.msk.f32.vlgmr.msra.gmra.mrb[0].mxu1 %vm130_vm1, %v129_v20 }
   0xc   :  { %1330 = vmatpush3.bf16.msra.mxu1 %v1531_v5  ;;  %1243 = vmatprep.mubr.msk.f32.mxu1 %vm1487_vm0, %v1488_v7 }
   0xd   :  { %1331 = vmatprep.subr.bf16.mxu1 %v1486_v4 }
  0x10   :  { %v1383_v21 = vpop.eup %1382  ;;  %1333 = vmatpush3.bf16.msra.mxu1 %v1553_v13 }
  0x11   :  { %v1385_v22 = vpop.eup %1384  ;;  %v37_v23 = vadd.f32 1.0, %v1383_v21  ;;  %1340 = vmatprep.subr.bf16.mxu1 %v1486_v4 }
  0x12   :  { %v38_v24 = vadd.f32 1.0, %v1385_v22 }
  0x13   :  { %1386 = vrcp.f32 %v37_v23 }
  0x14   :  { %1388 = vrcp.f32 %v38_v24 }
  0x1d   :  { %v1387_v25 = vpop.eup %1386 }
  0x1e   :  { %v1389_v26 = vpop.eup %1388  ;;  %1210 = vmatprep.mubr.msk.f32.mxu0 %vm47_vm2, %v1387_v25 }
  0x1f   :  { %1211 = vmatmul.mubr.msk.f32.vlgmr.msra.gmra.mrb[0].mxu0 %vm47_vm2, %v1389_v26 }
  0x20   :  { %1324 = vmatpush3.bf16.msra.mxu0 %v1531_v5  ;;  %1232 = vmatprep.mubr.msk.f32.mxu0 %vm1487_vm0, %v1488_v7 }
  0x21   :  { %1325 = vmatprep.subr.bf16.mxu0 %v1486_v4 }
  0x24   :  { %1327 = vmatpush3.bf16.msra.mxu0 %v1553_v13 }
  0x25   :  { %1334 = vmatprep.subr.bf16.mxu0 %v1486_v4 }
  0x7b   :  { %v1585_v27 = vpop.permute.xlu0 %216 }
  0xde   :  { %v200_v28 = vpop.f32.mrb[0].mxu1 }
  0xdf   :  { %v219_v29 = vadd.f32 %v1585_v27, %v200_v28  ;;  %v1223_v30 = vpop.f32.mrb[1].mxu1 }
  0xe1   :  { %221 = vrot.lane.b32.xlu0 %v219_v29, %s1489_s8 }
  0xe5   :  { %237 = vrot.lane.b32.xlu0 %v129_v20, %s1490_s1 }
  0xf2   :  { %v1212_v33 = vpop.f32.mrb[0].mxu0 }
  0xf3   :  { %v1591_v34 = vadd.f32 %v1212_v33, %v46_v32  ;;  %v120_v35 = vpop.f32.mrb[1].mxu0 }
  0xf4   :  { %v1593_v36 = vadd.f32 %v120_v35, %v46_v32 }
  0xf6   :  { %v204_v37 = vadd.f32 %v200_v28, %v1593_v36 }
  0xf8   :  { %v1139_v38 = vmul.f32 -1.442695, %v204_v37 }
  0xfa   :  { %1390 = vpow2.f32 %v1139_v38 }
 0x104   :  { %v1391_v39 = vpop.eup %1390 }
 0x105   :  { %v208_v40 = vadd.f32 1.0, %v1391_v39 }
 0x107   :  { %1392 = vrcp.f32 %v208_v40 }
 0x111   :  { %v1393_v41 = vpop.eup %1392 }
 0x112   :  { %v231_v48 = vsub.f32 1.0, %v1393_v41 }
 0x153   :  { %v222_v42 = vpop.permute.xlu0 %221 }
 0x154   :  { %v224_v43 = vmul.f32 %v1393_v41, %v222_v42 }
 0x156   :  { %226 = vrot.lane.b32.xlu1 %v224_v43, %s1489_s8 }
 0x157   :  { %v238_v47 = vpop.permute.xlu0 %237 }
 0x158   :  { %v240_v50 = vmul.f32 %v1393_v41, %v238_v47 }
 0x1c8   :  { %v227_v44 = vpop.permute.xlu1 %226 }
 0x1c9   :  { %v229_v45 = vadd.f32 %v227_v44, %v1593_v36 }
 0x1cb   :  { %1394 = vtanh.f32 %v229_v45 }
 0x1d5   :  { %v1395_v46 = vpop.eup %1394 }
 0x1d6   :  { %233 = vrot.lane.b32.xlu1 %v1395_v46, %s1491_s9 }
 0x248   :  { %v234_v49 = vpop.permute.xlu1 %233 }
 0x249   :  { %v236_v51 = vmul.f32 %v234_v49, %v231_v48 }
 0x24b   :  { %v1599_v52 = vadd.f32 %v240_v50, %v236_v51 }
 0x24d   :  { %243 = vrot.lane.b32.xlu1 %v1599_v52, %s1491_s9  ;;  %v346_v9 = vrot.slane %v1599_v52, 6 }
 0x2bf   :  { %v244_v53 = vpop.permute.xlu1 %243 }
 0x2c0   :  { %1233 = vmatmul.mubr.msk.f32.vlgmr.msra.gmra.mrb[2].mxu0 %vm130_vm1, %v244_v53 }
 0x2c1   :  { %1336 = vmatpush3.bf16.msra.mxu0 %v1531_v5  ;;  %1254 = vmatprep.mubr.msk.f32.mxu0 %vm1487_vm0, %v1488_v7 }
 0x2c2   :  { %1337 = vmatprep.subr.bf16.mxu0 %v1486_v4 }
 0x2c5   :  { %1339 = vmatpush3.bf16.msra.mxu0 %v1553_v13 }
 0x2c6   :  { %1346 = vmatprep.subr.bf16.mxu0 %v1486_v4 }
 0x393   :  { %v313_v54 = vpop.f32.mrb[2].mxu0 }
 0x394   :  { %v327_v55 = vadd.f32 %v313_v54, %v1585_v27  ;;  %v1234_v56 = vpop.f32.mrb[3].mxu0  ;;  %v318_v58 = vrot.slane %v313_v54, 6 }
 0x396   :  { %v329_v57 = vrot.slane %v327_v55, 6  ;;  %v320_v59 = vadd.f32 %v318_v58, %v1593_v36 }
 0x398   :  { %330 = vrot.lane.b32.xlu0 %v329_v57, %s1489_s8  ;;  %v1141_v60 = vmul.f32 -1.442695, %v320_v59 }
 0x39a   :  { %1396 = vpow2.f32 %v1141_v60 }
 0x3a4   :  { %v1397_v61 = vpop.eup %1396 }
 0x3a5   :  { %v324_v62 = vadd.f32 1.0, %v1397_v61 }
 0x3a7   :  { %1398 = vrcp.f32 %v324_v62 }
 0x3b1   :  { %v1399_v63 = vpop.eup %1398 }
 0x3b2   :  { %v340_v8 = vsub.f32 1.0, %v1399_v63  ;;  %v348_v14 = vmul.f32 %v1399_v63, %v346_v9 }
 0x40a   :  { %v331_v0 = vpop.permute.xlu0 %330 }
 0x40b   :  { %v333_v1 = vmul.f32 %v1399_v63, %v331_v0 }
 0x40d   :  { %335 = vrot.lane.b32.xlu1 %v333_v1, %s1489_s8 }
 0x47f   :  { %v336_v2 = vpop.permute.xlu1 %335 }
 0x480   :  { %v338_v3 = vadd.f32 %v336_v2, %v1593_v36 }
 0x482   :  { %1400 = vtanh.f32 %v338_v3 }
 0x48c   :  { %v1401_v6 = vpop.eup %1400 }
 0x48d   :  { %342 = vrot.lane.b32.xlu0 %v1401_v6, %s1491_s9 }
 0x4ff   :  { %v343_v10 = vpop.permute.xlu0 %342 }
 0x500   :  { %v345_v11 = vmul.f32 %v343_v10, %v340_v8 }
 0x502   :  { %v349_v15 = vadd.f32 %v348_v14, %v345_v11 }
 0x504   :  { %v351_v16 = vrot.slane %v349_v15, 2  ;;  %v455_v38 = vrot.slane %v349_v15, 6  ;;  %v1005_v43 = vsel %vm1004_vm3, %v1599_v52, %v349_v15 }
 0x506   :  { %352 = vrot.lane.b32.xlu1 %v351_v16, %s1491_s9 }
 0x578   :  { %v353_v18 = vpop.permute.xlu1 %352 }
 0x579   :  { %1244 = vmatmul.mubr.msk.f32.vlgmr.msra.gmra.mrb[2].mxu1 %vm130_vm1, %v353_v18 }
 0x57a   :  { %1342 = vmatpush3.bf16.msra.mxu1 %v1531_v5  ;;  %1265 = vmatprep.mubr.msk.f32.mxu1 %vm1487_vm0, %v1488_v7 }
 0x57b   :  { %1343 = vmatprep.subr.bf16.mxu1 %v1486_v4 }
 0x57e   :  { %1345 = vmatpush3.bf16.msra.mxu1 %v1553_v13 }
 0x57f   :  { %1352 = vmatprep.subr.bf16.mxu1 %v1486_v4 }
 0x64c   :  { %v422_v19 = vpop.f32.mrb[2].mxu1 }
 0x64d   :  { %v436_v20 = vadd.f32 %v422_v19, %v1585_v27  ;;  %v1245_v21 = vpop.f32.mrb[3].mxu1  ;;  %v427_v23 = vrot.slane %v422_v19, 4 }
 0x64f   :  { %v438_v22 = vrot.slane %v436_v20, 4  ;;  %v429_v24 = vadd.f32 %v427_v23, %v1593_v36 }
 0x651   :  { %439 = vrot.lane.b32.xlu0 %v438_v22, %s1489_s8  ;;  %v1143_v25 = vmul.f32 -1.442695, %v429_v24 }
 0x653   :  { %1402 = vpow2.f32 %v1143_v25 }
 0x65d   :  { %v1403_v26 = vpop.eup %1402 }
 0x65e   :  { %v433_v28 = vadd.f32 1.0, %v1403_v26 }
 0x660   :  { %1404 = vrcp.f32 %v433_v28 }
 0x66a   :  { %v1405_v29 = vpop.eup %1404 }
 0x66b   :  { %v449_v37 = vsub.f32 1.0, %v1405_v29  ;;  %v457_v40 = vmul.f32 %v1405_v29, %v455_v38 }
 0x6c3   :  { %v440_v30 = vpop.permute.xlu0 %439 }
 0x6c4   :  { %v442_v31 = vmul.f32 %v1405_v29, %v440_v30 }
 0x6c6   :  { %444 = vrot.lane.b32.xlu1 %v442_v31, %s1489_s8 }
 0x738   :  { %v445_v32 = vpop.permute.xlu1 %444 }
 0x739   :  { %v447_v33 = vadd.f32 %v445_v32, %v1593_v36 }
 0x73b   :  { %1406 = vtanh.f32 %v447_v33 }
 0x745   :  { %v1407_v35 = vpop.eup %1406 }
 0x746   :  { %451 = vrot.lane.b32.xlu0 %v1407_v35, %s1491_s9 }
 0x7b8   :  { %v452_v39 = vpop.permute.xlu0 %451 }
 0x7b9   :  { %v454_v41 = vmul.f32 %v452_v39, %v449_v37 }
 0x7bb   :  { %v458_v42 = vadd.f32 %v457_v40, %v454_v41 }
 0x7bd   :  { %v460_v44 = vrot.slane %v458_v42, 4  ;;  %v1007_v45 = vsel %vm1006_vm4, %v1005_v43, %v458_v42  ;;  %v564_v63 = vrot.slane %v458_v42, 6 }
 0x7bf   :  { %461 = vrot.lane.b32.xlu1 %v460_v44, %s1491_s9 }
 0x831   :  { %v462_v46 = vpop.permute.xlu1 %461 }
 0x832   :  { %1255 = vmatmul.mubr.msk.f32.vlgmr.msra.gmra.mrb[4].mxu0 %vm130_vm1, %v462_v46 }
 0x833   :  { %1348 = vmatpush3.bf16.msra.mxu0 %v1531_v5  ;;  %1276 = vmatprep.mubr.msk.f32.mxu0 %vm1487_vm0, %v1488_v7 }
 0x834   :  { %1349 = vmatprep.subr.bf16.mxu0 %v1486_v4 }
 0x837   :  { %1351 = vmatpush3.bf16.msra.mxu0 %v1553_v13 }
 0x838   :  { %1358 = vmatprep.subr.bf16.mxu0 %v1486_v4 }
 0x905   :  { %v531_v47 = vpop.f32.mrb[4].mxu0 }
 0x906   :  { %v545_v48 = vadd.f32 %v531_v47, %v1585_v27  ;;  %v1256_v49 = vpop.f32.mrb[5].mxu0  ;;  %v536_v51 = vrot.slane %v531_v47, 2 }
 0x908   :  { %v547_v50 = vrot.slane %v545_v48, 2  ;;  %v538_v52 = vadd.f32 %v536_v51, %v1593_v36 }
 0x90a   :  { %548 = vrot.lane.b32.xlu0 %v547_v50, %s1489_s8  ;;  %v1145_v53 = vmul.f32 -1.442695, %v538_v52 }
 0x90c   :  { %1408 = vpow2.f32 %v1145_v53 }
 0x916   :  { %v1409_v54 = vpop.eup %1408 }
 0x917   :  { %v542_v55 = vadd.f32 1.0, %v1409_v54 }
 0x919   :  { %1410 = vrcp.f32 %v542_v55 }
 0x923   :  { %v1411_v56 = vpop.eup %1410 }
 0x924   :  { %v558_v62 = vsub.f32 1.0, %v1411_v56  ;;  %v566_v1 = vmul.f32 %v1411_v56, %v564_v63 }
 0x97c   :  { %v549_v57 = vpop.permute.xlu0 %548 }
 0x97d   :  { %v551_v58 = vmul.f32 %v1411_v56, %v549_v57 }
 0x97f   :  { %553 = vrot.lane.b32.xlu1 %v551_v58, %s1489_s8 }
 0x9f1   :  { %v554_v59 = vpop.permute.xlu1 %553 }
 0x9f2   :  { %v556_v60 = vadd.f32 %v554_v59, %v1593_v36 }
 0x9f4   :  { %1412 = vtanh.f32 %v556_v60 }
 0x9fe   :  { %v1413_v61 = vpop.eup %1412 }
 0x9ff   :  { %560 = vrot.lane.b32.xlu0 %v1413_v61, %s1491_s9 }
 0xa71   :  { %v561_v0 = vpop.permute.xlu0 %560 }
 0xa72   :  { %v563_v2 = vmul.f32 %v561_v0, %v558_v62 }
 0xa74   :  { %v567_v3 = vadd.f32 %v566_v1, %v563_v2 }
 0xa76   :  { %v569_v6 = vrot.slane %v567_v3, 6  ;;  %v1649_v8 = vsel %vm1008_vm5, %v1007_v45, %v567_v3 }
 0xa78   :  { %570 = vrot.lane.b32.xlu1 %v569_v6, %s1491_s9 }
 0xaea   :  { %v571_v9 = vpop.permute.xlu1 %570 }
 0xaeb   :  { %1266 = vmatmul.mubr.msk.f32.vlgmr.msra.gmra.mrb[4].mxu1 %vm130_vm1, %v571_v9 }
 0xaec   :  { %1354 = vmatpush3.bf16.msra.mxu1 %v1531_v5  ;;  %1287 = vmatprep.mubr.msk.f32.mxu1 %vm1487_vm0, %v1488_v7 }
 0xaed   :  { %1355 = vmatprep.subr.bf16.mxu1 %v1486_v4 }
 0xaf0   :  { %1357 = vmatpush3.bf16.msra.mxu1 %v1553_v13 }
 0xbbe   :  { %v640_v36 = vpop.f32.mrb[4].mxu1 }
 0xbbf   :  { %v651_v10 = vadd.f32 %v640_v36, %v1585_v27  ;;  %v1267_v11 = vpop.f32.mrb[5].mxu1  ;;  %v644_v14 = vadd.f32 %v640_v36, %v1591_v34 }
 0xbc1   :  { %653 = vrot.lane.b32.xlu0 %v651_v10, %s1489_s8  ;;  %v1147_v15 = vmul.f32 -1.442695, %v644_v14 }
 0xbc3   :  { %1414 = vpow2.f32 %v1147_v15 }
 0xbcd   :  { %v1415_v16 = vpop.eup %1414 }
 0xbce   :  { %v648_v18 = vadd.f32 1.0, %v1415_v16 }
 0xbd0   :  { %1416 = vrcp.f32 %v648_v18 }
 0xbda   :  { %v1417_v19 = vpop.eup %1416 }
 0xbdb   :  { %v663_v25 = vsub.f32 1.0, %v1417_v19  ;;  %v670_v28 = vmul.f32 %v1417_v19, %v569_v6 }
 0xc33   :  { %v654_v20 = vpop.permute.xlu0 %653 }
 0xc34   :  { %v656_v21 = vmul.f32 %v1417_v19, %v654_v20 }
 0xc36   :  { %658 = vrot.lane.b32.xlu1 %v656_v21, %s1489_s8 }
 0xca8   :  { %v659_v22 = vpop.permute.xlu1 %658 }
 0xca9   :  { %v661_v23 = vadd.f32 %v659_v22, %v1591_v34 }
 0xcab   :  { %1418 = vtanh.f32 %v661_v23 }
 0xcb5   :  { %v1419_v24 = vpop.eup %1418 }
 0xcb6   :  { %665 = vrot.lane.b32.xlu0 %v1419_v24, %s1491_s9 }
 0xd28   :  { %v666_v26 = vpop.permute.xlu0 %665 }
 0xd29   :  { %v668_v29 = vmul.f32 %v666_v26, %v663_v25 }
 0xd2b   :  { %v1664_v30 = vadd.f32 %v670_v28, %v668_v29 }
 0xd2d   :  { %673 = vrot.lane.b32.xlu1 %v1664_v30, %s1491_s9  ;;  %v776_v46 = vrot.slane %v1664_v30, 6 }
 0xd9f   :  { %v674_v31 = vpop.permute.xlu1 %673 }
 0xda0   :  { %1277 = vmatmul.mubr.msk.f32.vlgmr.msra.gmra.mrb[6].mxu0 %vm130_vm1, %v674_v31 }
 0xda1   :  { %1360 = vmatpush3.bf16.msra.mxu0 %v1531_v5  ;;  %1298 = vmatprep.mubr.msk.f32.mxu0 %vm1487_vm0, %v1488_v7 }
 0xda2   :  { %1361 = vmatprep.subr.bf16.mxu0 %v1486_v4 }
 0xda5   :  { %1363 = vmatpush3.bf16.msra.mxu0 %v1553_v13 }
 0xe73   :  { %v743_v32 = vpop.f32.mrb[6].mxu0 }
 0xe74   :  { %v757_v33 = vadd.f32 %v743_v32, %v1585_v27  ;;  %v1278_v35 = vpop.f32.mrb[7].mxu0  ;;  %v748_v38 = vrot.slane %v743_v32, 6 }
 0xe76   :  { %v759_v37 = vrot.slane %v757_v33, 6  ;;  %v750_v39 = vadd.f32 %v748_v38, %v1591_v34  ;;  %v25_v38 = vld [vmem:[%s1749_s2 + $0x38] sm:$0xff] }
 0xe78   :  { %760 = vrot.lane.b32.xlu0 %v759_v37, %s1489_s8  ;;  %v1149_v40 = vmul.f32 -1.442695, %v750_v39  ;;  %v24_v37 = vld [vmem:[%s1749_s2 + $0x30] sm:$0xff]  ;;  %v26_v39 = vld [vmem:[%s1749_s2 + $0x40] sm:$0xff] }
 0xe7a   :  { %1420 = vpow2.f32 %v1149_v40 }
 0xe84   :  { %v1421_v5 = vpop.eup %1420 }
 0xe85   :  { %v754_v41 = vadd.f32 1.0, %v1421_v5 }
 0xe87   :  { %1422 = vrcp.f32 %v754_v41 }
 0xe91   :  { %v1423_v7 = vpop.eup %1422 }
 0xe92   :  { %v770_v45 = vsub.f32 1.0, %v1423_v7  ;;  %v778_v49 = vmul.f32 %v1423_v7, %v776_v46 }
 0xeea   :  { %v761_v42 = vpop.permute.xlu0 %760 }
 0xeeb   :  { %v763_v4 = vmul.f32 %v1423_v7, %v761_v42 }
 0xeed   :  { %765 = vrot.lane.b32.xlu1 %v763_v4, %s1489_s8 }
 0xf5f   :  { %v766_v13 = vpop.permute.xlu1 %765 }
 0xf60   :  { %v768_v43 = vadd.f32 %v766_v13, %v1591_v34 }
 0xf62   :  { %1424 = vtanh.f32 %v768_v43 }
 0xf6c   :  { %v1425_v44 = vpop.eup %1424 }
 0xf6d   :  { %772 = vrot.lane.b32.xlu0 %v1425_v44, %s1491_s9 }
 0xfdf   :  { %v773_v47 = vpop.permute.xlu0 %772 }
 0xfe0   :  { %v775_v48 = vmul.f32 %v773_v47, %v770_v45 }
 0xfe2   :  { %v779_v50 = vadd.f32 %v778_v49, %v775_v48 }
 0xfe4   :  { %v781_v51 = vrot.slane %v779_v50, 2  ;;  %v885_v9 = vrot.slane %v779_v50, 6  ;;  %v1010_v15 = vsel %vm1004_vm3, %v1664_v30, %v779_v50 }
 0xfe6   :  { %782 = vrot.lane.b32.xlu1 %v781_v51, %s1491_s9 }
0x1058   :  { %v783_v52 = vpop.permute.xlu1 %782 }
0x1059   :  { %1288 = vmatmul.mubr.msk.f32.vlgmr.msra.gmra.mrb[6].mxu1 %vm130_vm1, %v783_v52 }
0x112c   :  { %v852_v53 = vpop.f32.mrb[6].mxu1 }
0x112d   :  { %v866_v54 = vadd.f32 %v852_v53, %v1585_v27  ;;  %v1289_v55 = vpop.f32.mrb[7].mxu1  ;;  %v857_v57 = vrot.slane %v852_v53, 4 }
0x112f   :  { %v868_v56 = vrot.slane %v866_v54, 4  ;;  %v859_v58 = vadd.f32 %v857_v57, %v1591_v34 }
0x1131   :  { %869 = vrot.lane.b32.xlu0 %v868_v56, %s1489_s8  ;;  %v1151_v59 = vmul.f32 -1.442695, %v859_v58 }
0x1133   :  { %1426 = vpow2.f32 %v1151_v59 }
0x113d   :  { %v1427_v60 = vpop.eup %1426 }
0x113e   :  { %v863_v61 = vadd.f32 1.0, %v1427_v60 }
0x1140   :  { %1428 = vrcp.f32 %v863_v61 }
0x114a   :  { %v1429_v62 = vpop.eup %1428 }
0x114b   :  { %v879_v6 = vsub.f32 1.0, %v1429_v62  ;;  %v887_v10 = vmul.f32 %v1429_v62, %v885_v9 }
0x11a3   :  { %v870_v63 = vpop.permute.xlu0 %869 }
0x11a4   :  { %v872_v0 = vmul.f32 %v1429_v62, %v870_v63 }
0x11a6   :  { %874 = vrot.lane.b32.xlu1 %v872_v0, %s1489_s8 }
0x1218   :  { %v875_v1 = vpop.permute.xlu1 %874 }
0x1219   :  { %v877_v2 = vadd.f32 %v875_v1, %v1591_v34 }
0x121b   :  { %1430 = vtanh.f32 %v877_v2 }
0x1225   :  { %v1431_v3 = vpop.eup %1430 }
0x1226   :  { %881 = vrot.lane.b32.xlu0 %v1431_v3, %s1491_s9 }
0x1298   :  { %v882_v36 = vpop.permute.xlu0 %881 }
0x1299   :  { %v884_v11 = vmul.f32 %v882_v36, %v879_v6 }
0x129b   :  { %v888_v14 = vadd.f32 %v887_v10, %v884_v11 }
0x129d   :  { %v890_v16 = vrot.slane %v888_v14, 4  ;;  %v1011_v18 = vsel %vm1006_vm4, %v1010_v15, %v888_v14  ;;  %v994_v7 = vrot.slane %v888_v14, 6 }
0x129f   :  { %891 = vrot.lane.b32.xlu1 %v890_v16, %s1491_s9 }
0x1311   :  { %v892_v19 = vpop.permute.xlu1 %891 }
0x1312   :  { %1299 = vmatmul.mubr.msk.f32.vlgmr.msra.gmra.mrb[8].mxu0 %vm130_vm1, %v892_v19 }
0x13e5   :  { %v961_v20 = vpop.f32.mrb[8].mxu0 }
0x13e6   :  { %v975_v21 = vadd.f32 %v961_v20, %v1585_v27  ;;  %v1300_v22 = vpop.f32.mrb[9].mxu0  ;;  %v966_v24 = vrot.slane %v961_v20, 2 }
0x13e8   :  { %v977_v23 = vrot.slane %v975_v21, 2  ;;  %v968_v25 = vadd.f32 %v966_v24, %v1591_v34 }
0x13ea   :  { %978 = vrot.lane.b32.xlu0 %v977_v23, %s1489_s8  ;;  %v1153_v26 = vmul.f32 -1.442695, %v968_v25 }
0x13ec   :  { %1432 = vpow2.f32 %v1153_v26 }
0x13f6   :  { %v1433_v28 = vpop.eup %1432 }
0x13f7   :  { %v972_v29 = vadd.f32 1.0, %v1433_v28 }
0x13f9   :  { %1434 = vrcp.f32 %v972_v29 }
0x1403   :  { %v1435_v30 = vpop.eup %1434 }
0x1404   :  { %v988_v41 = vsub.f32 1.0, %v1435_v30  ;;  %v996_v4 = vmul.f32 %v1435_v30, %v994_v7 }
0x145c   :  { %v979_v31 = vpop.permute.xlu0 %978 }
0x145d   :  { %v981_v32 = vmul.f32 %v1435_v30, %v979_v31 }
0x145f   :  { %983 = vrot.lane.b32.xlu1 %v981_v32, %s1489_s8 }
0x1463   :  { %1019 = vrot.lane.b32.xlu1 %v1649_v8, %s1491_s9  ;;  %v1364_v8 = vpack.c.bf16 %v25_v38, %v24_v37 }
0x1465   :  { %1365 = vmatprep.subr.bf16.mxu1 %v1364_v8 }
0x1466   :  { %1367 = vmatpush3.bf16.msra.mxu1 %v1364_v8 }
0x14d1   :  { %v984_v27 = vpop.permute.xlu1 %983 }
0x14d2   :  { %v986_v33 = vadd.f32 %v984_v27, %v1591_v34  ;;  %v27_v34 = vld [vmem:[%s1749_s2 + $0x48] sm:$0xff]  ;;  %s1492_s2 = smov [#allocation4]  }
0x14d3   :  { %v1368_v40 = vpack.c.bf16 %v27_v34, %v26_v39  ;;  %s1122_s18 = sshll.u32 %s1492_s2, 4  ;;  %s1123_s18 = int_to_ptr.vmem [resolvable:$true] %s1122_s18 }
0x14d4   :  { %1436 = vtanh.f32 %v986_v33  ;;  %s1438_s19 = scalar_lea.vmem %s1123_s18, 32  ;;  %p1443_p1 = scmp.lt.s32.totalorder %s1123_s18, %s1123_s18 }
0x14d5   :  { %v1020_v35 = vpop.permute.xlu1 %1019  ;;  %1369 = vmatprep.subr.bf16.mxu1 %v1368_v40  ;;  %p1439_p0 = scmp.ne.s32.totalorder %s1123_s18, %s1438_s19  ;;  %p1444_p2 = scmp.lt.s32.totalorder %s1438_s19, %s1438_s19 }
0x14d6   :  { %1309 = vmatprep.mubr.msk.f32.mxu1 %vm130_vm1, %v1020_v35  ;;  %1371 = vmatpush3.bf16.msra.mxu1 %v1368_v40 }
0x14d7   :  { %p1445_p3 = por %p1444_p2, %p1443_p1 }
0x14d9   :  { %p1446_p4 = pnand %p1445_p3, %p1439_p0 }
0x14de   :  { %v1437_v5 = vpop.eup %1436 }
0x14df   :  { %990 = vrot.lane.b32.xlu0 %v1437_v5, %s1491_s9 }
0x1551   :  { %v991_v42 = vpop.permute.xlu0 %990 }
0x1552   :  { %v993_v13 = vmul.f32 %v991_v42, %v988_v41 }
0x1554   :  { %v997_v43 = vadd.f32 %v996_v4, %v993_v13 }
0x1556   :  { %999 = vrot.lane.b32.xlu1 %v997_v43, %s1491_s9  ;;  %v1012_v44 = vsel %vm1008_vm5, %v1011_v18, %v997_v43 }
0x1557   :  { %1021 = vrot.lane.b32.xlu0 %v1012_v44, %s1491_s9 }
0x15c8   :  { %v1000_v45 = vpop.permute.xlu1 %999 }
0x15c9   :  { %1003 = vst.msk [vmem:[#allocation4 - $0x6] sm:$0xc0] %vm1002_vm6, %v1000_v45  ;;  %v1022_v46 = vpop.permute.xlu0 %1021 }
0x15ca   :  { %1310 = vmatmul.mubr.msk.f32.vlgmr.msra.gmra.mrb[8].mxu1 %vm130_vm1, %v1022_v46 }
0x15cb   :  { %1449 = shalt.err (!%p1446_p4)
}
0x15cc   :  { %s1450_s22 = scalar_lea.hbm %s1751_s4, 32 }
0x15cd   :  { %p1451_p5 = scmp.ne.s32.totalorder %s1751_s4, %s1450_s22  ;;  %p1454_p6 = scmp.lt.u32.totalorder %s1450_s22, %s1751_s4 }
0x15cf   :  { %p1456_p7 = pnand %p1454_p6, %p1451_p5 }
0x15d1   :  { %1459 = shalt.err (!%p1456_p7)
}
0x15d2   :  { %1125 = dma.vmem_to_hbm [thread:$0]  %s1123_s18, 32, %s1751_s4, [#allocation5]   ;;  %v1015_v47 = vsub.s32 2, %v1550_v12 }
0x15d3   :  { %s1493_s29 = smov [#allocation2]  }
0x15d4   :  { %v1016_v48 = vrot.slane %v1558_v17, %v1015_v47  ;;  %s1109_s30 = sshll.u32 %s1493_s29, 4  ;;  %s1110_s30 = int_to_ptr.vmem [resolvable:$true] %s1109_s30 }
0x15d5   :  { %s1460_s5 = scalar_lea.vmem %s1110_s30, 256  ;;  %p1465_p9 = scmp.lt.s32.totalorder %s1110_s30, %s1110_s30 }
0x15d6   :  { %p1461_p8 = scmp.ne.s32.totalorder %s1110_s30, %s1460_s5  ;;  %p1466_p10 = scmp.lt.s32.totalorder %s1460_s5, %s1460_s5 }
0x15d8   :  { %p1467_p11 = por %p1466_p10, %p1465_p9 }
0x15da   :  { %p1468_p12 = pnand %p1467_p11, %p1461_p8 }
0x169d   :  { %v1311_v49 = vpop.f32.mrb[8].mxu1 }
0x169e   :  { %v1099_v50 = vadd.f32 %v1311_v49, %v1016_v48  ;;  %v1093_v51 = vpop.f32.mrb[9].mxu1 }
0x169f   :  { %v1094_v52 = vadd.f32 %v1093_v51, %v1016_v48 }
0x16a0   :  { %1103 = vst.msk [vmem:[#allocation2 + $0x8] sm:$0xff] %vm47_vm2, %v1099_v50 }
0x16a1   :  { %1102 = vst.msk [vmem:[#allocation2] sm:$0xff] %vm47_vm2, %v1094_v52 }
0x16a2   :  { %1471 = shalt.err (!%p1468_p12)
}
0x16a3   :  { %s1472_s0 = scalar_lea.hbm %s1750_s3, 256 }
0x16a4   :  { %p1473_p13 = scmp.ne.s32.totalorder %s1750_s3, %s1472_s0  ;;  %p1476_p0 = scmp.lt.u32.totalorder %s1472_s0, %s1750_s3 }
0x16a6   :  { %p1478_p1 = pnand %p1476_p0, %p1473_p13 }
0x16a8   :  { %1481 = shalt.err (!%p1478_p1)
}
0x16a9   :  { %s1494_s10 = smov 128   ;;  %s1495_s11 = smov 8  }
0x16aa   :  { %1115 = dma.vmem_to_hbm [thread:$0]  %s1110_s30, 256, %s1750_s3, [#allocation3], %s1494_s10, %s1494_s10, %s1495_s11  }
0x16ab   :  { %1482 = dma.done.wait [#allocation3], 256  }
0x16ac   :  { %1483 = vsyncadd [#allocation3], 4294967040 }
0x16ad   :  { %1484 = dma.done.wait [#allocation5], 32  }
0x16ae   :  { %1485 = vsyncadd [#allocation5], 4294967264 }
0x16af   :  { %1132 = vsyncpa [#allocation3], 1 }
0x16b0   :  { %1133 = vsyncpa [#allocation5], 1 }

</bundles_post_ra>
